<compile_context>
chip_gen: v5e
topology: v5e:2x2
jax: 0.10.0
libtpu: 0.0.40
codegen_flags: <defaults>
</compile_context>

<pallas_src>
import functools

import jax
import jax.numpy as jnp
from jax.experimental import pallas as pl
from jax.experimental.pallas import tpu as pltpu

_LANES = 128
_SUBLANES = 8
# Per-input tile cap: 4096 rows x 128 lanes x 4 B = 2 MiB.
_MAX_ROWS_PER_BLOCK = 4096


def _round_up(x, m):
    return ((x + m - 1) // m) * m


def _contrastive_kernel(dist_ref, y_ref, out_ref, *, margin, rows_per_block):
    d = dist_ref[...].astype(jnp.float32)
    y = y_ref[...].astype(jnp.float32)

    mdist = jnp.maximum(jnp.float32(margin) - d, jnp.float32(0.0))
    loss = y * (d * d) + (jnp.float32(1.0) - y) * (mdist * mdist)

    # Reduce the row axis down to 8 sublanes with plain vreg-wise adds (VPU);
    # the one expensive cross-lane/sublane reduce happens once, in the
    # wrapper, on the tiny (num_blocks, 8, 128) partials array.
    partial = loss.reshape(rows_per_block // _SUBLANES, _SUBLANES, _LANES)
    out_ref[...] = jnp.sum(partial, axis=0)


def contrastive_loss(dist, y, margin=1.0):
    """Pallas implementation of ContrastiveLoss.forward(dist, y)."""
    assert dist.shape == y.shape, "dist and y must have the same shape"
    batch = y.shape[0]

    dist_flat = dist.reshape(-1)
    y_flat = y.reshape(-1)
    total = dist_flat.shape[0]

    # Pick a large row tile (multiple of 8 sublanes), then pad the flattened
    # inputs out to a whole number of (rows_per_block, 128) tiles.
    n_rows = pl.cdiv(total, _LANES)
    rows_per_block = min(_MAX_ROWS_PER_BLOCK, _round_up(n_rows, _SUBLANES))
    rows_per_block = max(_SUBLANES, (rows_per_block // _SUBLANES) * _SUBLANES)
    padded_rows = _round_up(n_rows, rows_per_block)
    padded_total = padded_rows * _LANES
    num_blocks = padded_rows // rows_per_block

    pad = padded_total - total
    if pad:
        # Loss-neutral padding: y=0 kills the first term, dist > margin kills
        # the clamped second term.
        dist_flat = jnp.concatenate(
            [dist_flat, jnp.full((pad,), margin + 1.0, dtype=dist_flat.dtype)])
        y_flat = jnp.concatenate(
            [y_flat, jnp.zeros((pad,), dtype=y_flat.dtype)])

    dist2d = dist_flat.reshape(padded_rows, _LANES)
    y2d = y_flat.reshape(padded_rows, _LANES)

    in_bytes = 2 * padded_total * dist2d.dtype.itemsize
    out_bytes = num_blocks * _SUBLANES * _LANES * 4

    partials = pl.pallas_call(
        functools.partial(
            _contrastive_kernel, margin=margin, rows_per_block=rows_per_block),
        out_shape=jax.ShapeDtypeStruct(
            (num_blocks, _SUBLANES, _LANES), jnp.float32),
        grid_spec=pltpu.PrefetchScalarGridSpec(
            num_scalar_prefetch=0,
            grid=(num_blocks,),
            in_specs=[
                pl.BlockSpec((rows_per_block, _LANES), lambda i: (i, 0)),
                pl.BlockSpec((rows_per_block, _LANES), lambda i: (i, 0)),
            ],
            # One independent partial per grid block (leading dim squeezed in
            # the kernel) so the grid axis is fully parallel (both v7x TCs).
            out_specs=pl.BlockSpec(
                (None, _SUBLANES, _LANES), lambda i: (i, 0, 0)),
        ),
        compiler_params=pltpu.CompilerParams(
            dimension_semantics=("parallel",),
            vmem_limit_bytes=32 * 1024 * 1024,
        ),
        cost_estimate=pl.CostEstimate(
            flops=6 * padded_total,
            transcendentals=0,
            bytes_accessed=in_bytes + out_bytes,
        ),
    )(dist2d, y2d)

    # loss = sum(...) / 2.0 / y.size(0)
    return jnp.sum(partials) / 2.0 / batch


def _reference(dist, y, margin=1.0):
    mdist = jnp.maximum(margin - dist, 0.0)
    loss = y * dist**2 + (1.0 - y) * mdist**2
    return jnp.sum(loss) / 2.0 / y.shape[0]


if __name__ == "__main__":
    key = jax.random.PRNGKey(0)
    k1, k2, k3, k4 = jax.random.split(key, 4)

    # Aligned case: flattens to exactly one (16, 128) tile.
    b0, f0 = 16, 128
    dist0 = jnp.abs(jax.random.normal(k1, (b0, f0), dtype=jnp.float32))
    y0 = jax.random.bernoulli(k2, 0.5, (b0, f0)).astype(jnp.float32)
    out0 = jax.block_until_ready(contrastive_loss(dist0, y0, margin=1.0))
    ref0 = _reference(dist0, y0, margin=1.0)
    assert jnp.allclose(out0, ref0, rtol=1e-5, atol=1e-5), (out0, ref0)

    # Ragged case: exercises the loss-neutral padding path.
    b1, f1 = 12, 48
    dist1 = jnp.abs(jax.random.normal(k3, (b1, f1), dtype=jnp.float32))
    y1 = jax.random.bernoulli(k4, 0.5, (b1, f1)).astype(jnp.float32)
    out1 = jax.block_until_ready(contrastive_loss(dist1, y1, margin=1.0))
    ref1 = _reference(dist1, y1, margin=1.0)
    assert jnp.allclose(out1, ref1, rtol=1e-5, atol=1e-5), (out1, ref1)

    print("KERNEL_OK")
</pallas_src>

<mosaic_0001>
module attributes {stable_mosaic.version = 11 : i64} {
  func.func @_contrastive_kernel(%arg0: i32, %arg1: memref<16x128xf32, #tpu.memory_space<vmem>>, %arg2: memref<16x128xf32, #tpu.memory_space<vmem>>, %arg3: memref<1x8x128xf32, #tpu.memory_space<vmem>>) attributes {dimension_semantics = [#tpu.dimension_semantics<parallel>], iteration_bounds = array<i64: 1>, scalar_prefetch = 0 : i64, scratch_operands = 0 : i64, tpu.core_type = #tpu.core_type<tc>, window_params = [{transform_indices = @transform_0, window_bounds = array<i64: 16, 128>}, {transform_indices = @transform_1, window_bounds = array<i64: 16, 128>}, {transform_indices = @transform_2, window_bounds = array<i64: 1, 8, 128>}]} {
    %c0 = arith.constant 0 : index
    %c0_0 = arith.constant 0 : index
    %0 = vector.load %arg1[%c0, %c0_0] : memref<16x128xf32, #tpu.memory_space<vmem>>, vector<16x128xf32>
    %c0_1 = arith.constant 0 : index
    %c0_2 = arith.constant 0 : index
    %1 = vector.load %arg2[%c0_1, %c0_2] : memref<16x128xf32, #tpu.memory_space<vmem>>, vector<16x128xf32>
    %cst = arith.constant 1.000000e+00 : f32
    %2 = vector.broadcast %cst : f32 to vector<16x128xf32>
    %3 = arith.subf %2, %0 : vector<16x128xf32>
    %cst_3 = arith.constant 0.000000e+00 : f32
    %4 = vector.broadcast %cst_3 : f32 to vector<16x128xf32>
    %5 = arith.maximumf %3, %4 : vector<16x128xf32>
    %6 = arith.mulf %0, %0 : vector<16x128xf32>
    %7 = arith.mulf %1, %6 : vector<16x128xf32>
    %cst_4 = arith.constant 1.000000e+00 : f32
    %8 = vector.broadcast %cst_4 : f32 to vector<16x128xf32>
    %9 = arith.subf %8, %1 : vector<16x128xf32>
    %10 = arith.mulf %5, %5 : vector<16x128xf32>
    %11 = arith.mulf %9, %10 : vector<16x128xf32>
    %12 = arith.addf %7, %11 : vector<16x128xf32>
    %13 = vector.shape_cast %12 : vector<16x128xf32> to vector<2x8x128xf32>
    %cst_5 = arith.constant dense<0.000000e+00> : vector<8x128xf32>
    %14 = vector.multi_reduction <add>, %13, %cst_5 [0] : vector<2x8x128xf32> to vector<8x128xf32>
    %c0_6 = arith.constant 0 : index
    %c0_7 = arith.constant 0 : index
    %c0_8 = arith.constant 0 : index
    %15 = vector.load %arg3[%c0_6, %c0_7, %c0_8] : memref<1x8x128xf32, #tpu.memory_space<vmem>>, vector<1x8x128xf32>
    %16 = vector.shape_cast %15 : vector<1x8x128xf32> to vector<8x128xf32>
    %17 = vector.shape_cast %14 : vector<8x128xf32> to vector<1x8x128xf32>
    tpu.vector_store %arg3[%c0_6, %c0_7, %c0_8], %17 {strides = array<i32>} : memref<1x8x128xf32, #tpu.memory_space<vmem>>, vector<1x8x128xf32>,
    return
  }
  func.func @transform_0(%arg0: i32) -> (i32, i32) {
    %c0_i32 = arith.constant 0 : i32
    %c0_i32_0 = arith.constant 0 : i32
    return %arg0, %c0_i32 : i32, i32
  }
  func.func @transform_1(%arg0: i32) -> (i32, i32) {
    %c0_i32 = arith.constant 0 : i32
    %c0_i32_0 = arith.constant 0 : i32
    return %arg0, %c0_i32 : i32, i32
  }
  func.func @transform_2(%arg0: i32) -> (i32, i32, i32) {
    %c0_i32 = arith.constant 0 : i32
    %c0_i32_0 = arith.constant 0 : i32
    %c0_i32_1 = arith.constant 0 : i32
    return %arg0, %c0_i32, %c0_i32_0 : i32, i32, i32
  }
}

</mosaic_0001>

<bundles_post_ra>
// kernel: tpu_custom_call.1
= control target key start
LH: loop header
LB: loop body
LE: loop exit
PB: predicated region body
PF: predicated region fallthrough
CT: control target
= control target key end

     0   :  { %7 = vsyncpa [#allocation3], 0  ;;  %s196_s0 = inlined_call_operand.hbm [shape: f32[16,128], index: 0, kind: input, shape index: {}]   ;;  %s197_s1 = inlined_call_operand.hbm [shape: f32[16,128], index: 1, kind: input, shape index: {}]   ;;  %s198_s2 = inlined_call_operand.hbm [shape: f32[1,8,128], index: 2, kind: output, shape index: {}]  }
   0x1   :  { %8 = vsyncpa [#allocation6], 0 }
   0x2   :  { %9 = vsyncpa [#allocation4], 0  ;;  %s14_s11 = sshll.u32 %s196_s0, 4  ;;  %s167_s12 = smov [#allocation2]   ;;  %s15_s11 = int_to_ptr.hbm [resolvable:$true] %s14_s11 }
   0x3   :  { %s16_s13 = sshll.u32 %s167_s12, 4  ;;  %s27_s16 = sshll.u32 %s197_s1, 4  ;;  %s17_s13 = int_to_ptr.vmem [resolvable:$true] %s16_s13  ;;  %s28_s16 = int_to_ptr.hbm [resolvable:$true] %s27_s16 }
   0x4   :  { %s168_s17 = smov 128   ;;  %s169_s18 = smov 8  }
   0x5   :  { %22 = dma.hbm_to_vmem [thread:$0]  %s15_s11, 256, %s17_s13, [#allocation3], %s168_s17, %s168_s17, %s169_s18  }
   0x6   :  { %s170_s19 = smov [#allocation5]  }
   0x7   :  { %s29_s20 = sshll.u32 %s170_s19, 4  ;;  %s30_s20 = int_to_ptr.vmem [resolvable:$true] %s29_s20 }
   0x8   :  { %35 = dma.hbm_to_vmem [thread:$0]  %s28_s16, 256, %s30_s20, [#allocation6], %s168_s17, %s168_s17, %s169_s18  }
   0x9   :  { %161 = dma.done.wait [#allocation3], 256  }
   0xa   :  { %162 = vsyncadd [#allocation3], 4294967040 }
   0xb   :  { %163 = dma.done.wait [#allocation6], 256  }
   0xc   :  { %164 = vsyncadd [#allocation6], 4294967040  ;;  %v44_v0 = vld [vmem:[#allocation2] sm:$0xff]  ;;  %v45_v1 = vld [vmem:[#allocation2 + $0x8] sm:$0xff]  ;;  %s171_s0 = smov [#allocation7]   ;;  %s73_s23 = sshll.u32 %s198_s2, 4  ;;  %s74_s23 = int_to_ptr.hbm [resolvable:$true] %s73_s23 }
   0xd   :  { %v46_v2 = vld [vmem:[#allocation5] sm:$0xff]  ;;  %v47_v3 = vld [vmem:[#allocation5 + $0x8] sm:$0xff]  ;;  %v48_v4 = vsub.f32 1.0, %v44_v0  ;;  %v49_v5 = vsub.f32 1.0, %v45_v1  ;;  %v52_v6 = vmul.f32 %v44_v0, %v44_v0  ;;  %v53_v7 = vmul.f32 %v45_v1, %v45_v1  ;;  %s71_s1 = sshll.u32 %s171_s0, 4  ;;  %s72_s1 = int_to_ptr.vmem [resolvable:$true] %s71_s1 }
   0xe   :  { %v56_v10 = vsub.f32 1.0, %v46_v2  ;;  %v57_v11 = vsub.f32 1.0, %v47_v3 }
   0xf   :  { %v50_v8 = vmax.f32 %v48_v4, 0.0  ;;  %v51_v9 = vmax.f32 %v49_v5, 0.0  ;;  %v54_v12 = vmul.f32 %v52_v6, %v46_v2  ;;  %v55_v13 = vmul.f32 %v53_v7, %v47_v3 }
  0x11   :  { %v58_v14 = vmul.f32 %v50_v8, %v50_v8  ;;  %v59_v15 = vmul.f32 %v51_v9, %v51_v9 }
  0x13   :  { %v60_v16 = vmul.f32 %v58_v14, %v56_v10  ;;  %v61_v17 = vmul.f32 %v59_v15, %v57_v11 }
  0x15   :  { %v62_v18 = vadd.f32 %v60_v16, %v54_v12  ;;  %v63_v19 = vadd.f32 %v61_v17, %v55_v13 }
  0x17   :  { %v64_v20 = vadd.f32 %v63_v19, %v62_v18 }
  0x19   :  { %65 = vst [vmem:[#allocation7] sm:$0xff] %v64_v20 }
  0x1a   :  { %76 = dma.vmem_to_hbm [thread:$0]  %s72_s1, 128, %s74_s23, [#allocation4]  }
  0x1b   :  { %165 = dma.done.wait [#allocation4], 128  }
  0x1c   :  { %166 = vsyncadd [#allocation4], 4294967168 }
  0x1d   :  { %81 = vsyncpa [#allocation3], 1 }
  0x1e   :  { %82 = vsyncpa [#allocation6], 1 }
  0x1f   :  { %83 = vsyncpa [#allocation4], 1 }

</bundles_post_ra>
